<compile_context>
chip_gen: v6e
topology: v6e:2x2x1
jax: 0.10.0
libtpu: 0.0.40
codegen_flags: <defaults>
</compile_context>

<pallas_src>
import functools

import jax
import jax.numpy as jnp
from jax.experimental import pallas as pl

LANE = 128            # TPU vreg lane width == fused per-layer block width
BIAS_LANE = LANE - 1  # activation lane that carries a constant 1.0 (bias fold)


def dueling_mlp_kernel(x_ref, w_ref, out_ref, *, num_layers, n_output):
    """Whole DuelingMLP forward, single invocation, params resident in VMEM.

    x_ref:   (B, 128) f32 — valid features in lanes [0:n_feature], lane 127 == 1.0
    w_ref:   (num_layers, 128, 128) bf16 fused weight+bias blocks
    out_ref: (B, 128) f32 — caller keeps lanes [0:n_output]
    """
    h = x_ref[...]  # f32 activations; elementwise stays f32 (v5e has no bf16 VPU)

    # Hidden layers + fused (adv||val) head hidden layer: relu(h @ W_l).
    # Bias is folded into row BIAS_LANE of W_l; column BIAS_LANE of every
    # non-final block is e_BIAS_LANE so the constant-1 lane survives the ReLU.
    for l in range(num_layers - 1):  # static python loop -> fully unrolled
        h = jnp.maximum(
            jnp.dot(h.astype(jnp.bfloat16), w_ref[l],
                    preferred_element_type=jnp.float32),
            0.0)

    # Final fused block-diagonal head layer (no ReLU):
    #   lanes [0:n_output]          -> adv + val (value column pre-replicated)
    #   lanes [n_output:2*n_output] -> adv alone (only used for the mean)
    o2 = jnp.dot(h.astype(jnp.bfloat16), w_ref[num_layers - 1],
                 preferred_element_type=jnp.float32)

    # PyTorch `adv.mean()` (no dim) is a GLOBAL scalar mean over the whole
    # (batch, n_output) advantage block — implemented as such here.
    # TODO(synk): a batch grid (+ "parallel" megacore on v7x) would need a
    # cross-tile reduction for this global mean; kept single-block since the
    # whole batch plus the ~128 KB bf16 slab trivially fit VMEM at these sizes.
    adv_mean = jnp.mean(o2[:, n_output:2 * n_output])

    # Lane-dense store: full 128-lane tile -> unmasked vst; wrapper slices.
    out_ref[...] = o2 - adv_mean


def fuse_params(params, n_feature, n_output):
    """Fuse the whole network into one (L, 128, 128) bf16 weight/bias slab.

    params: [(w_hid, b_hid)..., (wa1, ba1), (wa2, ba2), (wv1, bv1), (wv2, bv2)]
            with W as (in, out), b as (1, out), all f32.

    Per-layer 128x128 block layout:
      rows [0:in],   cols [0:out]      -> weight
      row  BIAS_LANE, cols [0:out]     -> bias
      row  BIAS_LANE, col  BIAS_LANE   -> 1.0 on non-final layers so the
                                          constant-1 activation lane is carried
                                          through the ReLU chain.
    """
    hidden = params[:-4]
    (wa1, ba1), (wa2, ba2), (wv1, bv1), (wv2, bv2) = params[-4:]
    d = wa1.shape[1]
    n = n_output

    # Size guard (per review): the single-slab / block-diagonal fusion is only
    # valid (and only free on the MXU) while every layer width fits one
    # 128-lane pass with lane BIAS_LANE reserved for the bias fold.
    widths = [n_feature] + [w.shape[1] for w, _ in hidden] + [2 * d, 2 * n]
    if max(widths) > BIAS_LANE:
        raise ValueError("layer width exceeds the 127-lane single-slab fusion; "
                         "split the dueling heads back into separate matmuls")

    def block(w, b, carry_bias_lane):
        blk = jnp.zeros((LANE, LANE), jnp.float32)
        blk = blk.at[:w.shape[0], :w.shape[1]].set(w)
        blk = blk.at[BIAS_LANE, :b.shape[1]].set(b[0])
        if carry_bias_lane:
            blk = blk.at[BIAS_LANE, BIAS_LANE].set(1.0)
        return blk

    blocks = [block(w, b, True) for w, b in hidden]

    # Heads layer 1: adv || val -> one wide block.
    blocks.append(block(jnp.concatenate([wa1, wv1], axis=1),
                        jnp.concatenate([ba1, bv1], axis=1), True))

    # Heads layer 2 (block diagonal, final, no ReLU):
    #   cols [0:n]  = adv + replicated val  (combined output lanes)
    #   cols [n:2n] = adv alone             (for the global mean)
    w_h2 = jnp.zeros((2 * d, 2 * n), jnp.float32)
    w_h2 = w_h2.at[:d, :n].set(wa2)
    w_h2 = w_h2.at[d:, :n].set(jnp.tile(wv2, (1, n)))
    w_h2 = w_h2.at[:d, n:].set(wa2)
    b_h2 = jnp.concatenate([ba2 + bv2, ba2], axis=1)
    blocks.append(block(w_h2, b_h2, False))

    # bf16 slab: MXU-native on v5e/v6e/v7x, halves the weight DMA.
    return jnp.stack(blocks).astype(jnp.bfloat16)


def dueling_mlp_forward(x, slab, n_output):
    batch, n_feature = x.shape
    num_layers = slab.shape[0]

    # Pad input to the lane-dense 128-wide activation layout and set the
    # constant-1 bias lane (pure layout plumbing outside the kernel).
    x_pad = (jnp.zeros((batch, LANE), x.dtype)
             .at[:, :n_feature].set(x)
             .at[:, BIAS_LANE].set(1.0))

    kernel = functools.partial(dueling_mlp_kernel,
                               num_layers=num_layers, n_output=n_output)

    out_pad = pl.pallas_call(
        kernel,
        out_shape=jax.ShapeDtypeStruct((batch, LANE), jnp.float32),
        grid=(),  # single shot: whole batch + fused weight slab resident in VMEM
        in_specs=[pl.BlockSpec(x_pad.shape, lambda: (0, 0)),
                  pl.BlockSpec(slab.shape, lambda: (0, 0, 0))],
        out_specs=pl.BlockSpec((batch, LANE), lambda: (0, 0)),
    )(x_pad, slab)

    # TODO(synk): if this runs once per env step (typical DQN inference),
    # amortize the pallas_call by looping steps inside the kernel (grid over
    # steps, constant index_map on the slab so weights stay VMEM-resident).
    return out_pad[:, :n_output]


def init_params(key, n_feature, n_hidden, n_output, dueling_size):
    """Deterministic xavier-uniform-style init (W as (in, out), small random b)."""
    dims = []
    prev = n_feature
    for h in n_hidden:
        dims.append((prev, h))
        prev = h
    dims += [(prev, dueling_size), (dueling_size, n_output),   # advLayer1/2
             (prev, dueling_size), (dueling_size, 1)]          # valLayer1/2

    params = []
    for fan_in, fan_out in dims:
        key, wk, bk = jax.random.split(key, 3)
        limit = jnp.sqrt(6.0 / (fan_in + fan_out))
        w = jax.random.uniform(wk, (fan_in, fan_out), jnp.float32, -limit, limit)
        b = jax.random.uniform(bk, (1, fan_out), jnp.float32, -0.1, 0.1)
        params.append((w, b))
    return params


def dueling_mlp_ref_fused(x, slab, n_output):
    """Pure-JAX reference with the SAME fused bf16-slab numerics as the kernel."""
    batch, n_feature = x.shape
    h = (jnp.zeros((batch, LANE), jnp.float32)
         .at[:, :n_feature].set(x)
         .at[:, BIAS_LANE].set(1.0))
    num_layers = slab.shape[0]
    for l in range(num_layers - 1):
        h = jnp.maximum(jnp.dot(h.astype(jnp.bfloat16), slab[l],
                                preferred_element_type=jnp.float32), 0.0)
    o2 = jnp.dot(h.astype(jnp.bfloat16), slab[num_layers - 1],
                 preferred_element_type=jnp.float32)
    return (o2 - jnp.mean(o2[:, n_output:2 * n_output]))[:, :n_output]


def dueling_mlp_ref_f32(x, params):
    """Unfused full-f32 reference matching the original PyTorch module math."""
    hidden = params[:-4]
    (wa1, ba1), (wa2, ba2), (wv1, bv1), (wv2, bv2) = params[-4:]
    h = x
    for w, b in hidden:
        h = jnp.maximum(h @ w + b, 0.0)
    adv = jnp.maximum(h @ wa1 + ba1, 0.0) @ wa2 + ba2
    val = jnp.maximum(h @ wv1 + bv1, 0.0) @ wv2 + bv2
    return val + adv - jnp.mean(adv)


if __name__ == "__main__":
    # Small, MLP-consistent shapes.
    batch = 8
    n_feature = 32
    n_hidden = [64, 64]
    n_output = 8
    dueling_size = 32

    key = jax.random.PRNGKey(0)
    key, xkey = jax.random.split(key)
    x = jax.random.normal(xkey, (batch, n_feature), dtype=jnp.float32)

    params = init_params(key, n_feature, n_hidden, n_output, dueling_size)
    slab = fuse_params(params, n_feature, n_output)

    out = jax.block_until_ready(dueling_mlp_forward(x, slab, n_output))
    assert out.shape == (batch, n_output)

    # Tight (gating) check against a reference with identical fused-bf16 numerics.
    ref = dueling_mlp_ref_fused(x, slab, n_output)
    assert jnp.allclose(out, ref, atol=1e-3, rtol=1e-3), "mismatch vs fused bf16 reference"

    # Loose sanity check against the original full-f32 module math
    # (covers bf16 weight/bias quantization).
    ref32 = dueling_mlp_ref_f32(x, params)
    assert jnp.allclose(out, ref32, atol=1e-1, rtol=1e-1), "mismatch vs f32 module reference"

    print("KERNEL_OK")
</pallas_src>

<mosaic_0001>
module attributes {stable_mosaic.version = 11 : i64} {
  func.func @dueling_mlp_kernel(%arg0: memref<8x128xf32, #tpu.memory_space<vmem>>, %arg1: memref<4x128x128xbf16, #tpu.memory_space<vmem>>, %arg2: memref<8x128xf32, #tpu.memory_space<vmem>>) attributes {dimension_semantics = [], scalar_prefetch = 0 : i64, scratch_operands = 0 : i64, tpu.core_type = #tpu.core_type<tc>} {
    %c0 = arith.constant 0 : index
    %c0_0 = arith.constant 0 : index
    %0 = vector.load %arg0[%c0, %c0_0] : memref<8x128xf32, #tpu.memory_space<vmem>>, vector<8x128xf32>
    %1 = arith.truncf %0 : vector<8x128xf32> to vector<8x128xbf16>
    %c0_1 = arith.constant 0 : index
    %c0_2 = arith.constant 0 : index
    %c0_3 = arith.constant 0 : index
    %2 = vector.load %arg1[%c0_1, %c0_2, %c0_3] : memref<4x128x128xbf16, #tpu.memory_space<vmem>>, vector<1x128x128xbf16>
    %3 = vector.shape_cast %2 : vector<1x128x128xbf16> to vector<128x128xbf16>
    %cst = arith.constant dense<0.000000e+00> : vector<8x128xf32>
    %4 = tpu.matmul %1, %3, %cst {dimension_numbers = #tpu.dot_dimension_numbers<[1], [0], [0], [1], [0, 0, 1, 1], [], []>} : vector<8x128xbf16>, vector<128x128xbf16>, vector<8x128xf32> -> vector<8x128xf32>
    %cst_4 = arith.constant 0.000000e+00 : f32
    %5 = vector.broadcast %cst_4 : f32 to vector<8x128xf32>
    %6 = arith.maximumf %4, %5 : vector<8x128xf32>
    %7 = arith.truncf %6 : vector<8x128xf32> to vector<8x128xbf16>
    %c1 = arith.constant 1 : index
    %c0_5 = arith.constant 0 : index
    %c0_6 = arith.constant 0 : index
    %8 = vector.load %arg1[%c1, %c0_5, %c0_6] : memref<4x128x128xbf16, #tpu.memory_space<vmem>>, vector<1x128x128xbf16>
    %9 = vector.shape_cast %8 : vector<1x128x128xbf16> to vector<128x128xbf16>
    %cst_7 = arith.constant dense<0.000000e+00> : vector<8x128xf32>
    %10 = tpu.matmul %7, %9, %cst_7 {dimension_numbers = #tpu.dot_dimension_numbers<[1], [0], [0], [1], [0, 0, 1, 1], [], []>} : vector<8x128xbf16>, vector<128x128xbf16>, vector<8x128xf32> -> vector<8x128xf32>
    %cst_8 = arith.constant 0.000000e+00 : f32
    %11 = vector.broadcast %cst_8 : f32 to vector<8x128xf32>
    %12 = arith.maximumf %10, %11 : vector<8x128xf32>
    %13 = arith.truncf %12 : vector<8x128xf32> to vector<8x128xbf16>
    %c2 = arith.constant 2 : index
    %c0_9 = arith.constant 0 : index
    %c0_10 = arith.constant 0 : index
    %14 = vector.load %arg1[%c2, %c0_9, %c0_10] : memref<4x128x128xbf16, #tpu.memory_space<vmem>>, vector<1x128x128xbf16>
    %15 = vector.shape_cast %14 : vector<1x128x128xbf16> to vector<128x128xbf16>
    %cst_11 = arith.constant dense<0.000000e+00> : vector<8x128xf32>
    %16 = tpu.matmul %13, %15, %cst_11 {dimension_numbers = #tpu.dot_dimension_numbers<[1], [0], [0], [1], [0, 0, 1, 1], [], []>} : vector<8x128xbf16>, vector<128x128xbf16>, vector<8x128xf32> -> vector<8x128xf32>
    %cst_12 = arith.constant 0.000000e+00 : f32
    %17 = vector.broadcast %cst_12 : f32 to vector<8x128xf32>
    %18 = arith.maximumf %16, %17 : vector<8x128xf32>
    %19 = arith.truncf %18 : vector<8x128xf32> to vector<8x128xbf16>
    %c3 = arith.constant 3 : index
    %c0_13 = arith.constant 0 : index
    %c0_14 = arith.constant 0 : index
    %20 = vector.load %arg1[%c3, %c0_13, %c0_14] : memref<4x128x128xbf16, #tpu.memory_space<vmem>>, vector<1x128x128xbf16>
    %21 = vector.shape_cast %20 : vector<1x128x128xbf16> to vector<128x128xbf16>
    %cst_15 = arith.constant dense<0.000000e+00> : vector<8x128xf32>
    %22 = tpu.matmul %19, %21, %cst_15 {dimension_numbers = #tpu.dot_dimension_numbers<[1], [0], [0], [1], [0, 0, 1, 1], [], []>} : vector<8x128xbf16>, vector<128x128xbf16>, vector<8x128xf32> -> vector<8x128xf32>
    %23 = vector.extract_strided_slice %22 {offsets = [0, 8], sizes = [8, 8], strides = [1, 1]} : vector<8x128xf32> to vector<8x8xf32>
    %24 = vector.shape_cast %23 : vector<8x8xf32> to vector<1x8x8xf32>
    %cst_16 = arith.constant dense<0.000000e+00> : vector<1xf32>
    %25 = vector.multi_reduction <add>, %24, %cst_16 [1, 2] : vector<1x8x8xf32> to vector<1xf32>
    %26 = vector.shape_cast %25 : vector<1xf32> to vector<1x1x1xf32>
    %27 = vector.extract %26[0, 0, 0] : f32 from vector<1x1x1xf32>
    %cst_17 = arith.constant 6.400000e+01 : f32
    %28 = arith.divf %27, %cst_17 : f32
    %29 = vector.broadcast %28 : f32 to vector<8x128xf32>
    %30 = arith.subf %22, %29 : vector<8x128xf32>
    %c0_18 = arith.constant 0 : index
    %c0_19 = arith.constant 0 : index
    %31 = vector.load %arg2[%c0_18, %c0_19] : memref<8x128xf32, #tpu.memory_space<vmem>>, vector<8x128xf32>
    tpu.vector_store %arg2[%c0_18, %c0_19], %30 {strides = array<i32>} : memref<8x128xf32, #tpu.memory_space<vmem>>, vector<8x128xf32>,
    return
  }
}

</mosaic_0001>

<bundles_post_ra>
// kernel: tpu_custom_call.1
= control target key start
LH: loop header
LB: loop body
LE: loop exit
PB: predicated region body
PF: predicated region fallthrough
CT: control target
= control target key end

     0   :  { %7 = vsyncpa [#allocation3], 0  ;;  %s831_s0 = inlined_call_operand.hbm [shape: f32[8,128], index: 0, kind: input, shape index: {}]   ;;  %s832_s1 = inlined_call_operand.hbm [shape: bf16[4,128,128], index: 1, kind: input, shape index: {}]   ;;  %s833_s2 = inlined_call_operand.hbm [shape: f32[8,128], index: 2, kind: output, shape index: {}]  }
   0x1   :  { %8 = vsyncpa [#allocation6], 0 }
   0x2   :  { %9 = vsyncpa [#allocation4], 0  ;;  %s759_s9 = smov [#allocation2]   ;;  %s760_s11 = smov [#allocation5]  }
   0x3   :  { %s16_s10 = sshll.u32 %s759_s9, 4  ;;  %s25_s12 = sshll.u32 %s760_s11, 4  ;;  %s17_s10 = int_to_ptr.vmem [resolvable:$true] %s16_s10  ;;  %s26_s12 = int_to_ptr.vmem [resolvable:$true] %s25_s12 }
   0x4   :  { %s701_s13 = scalar_lea.vmem %s17_s10, 128  ;;  %p706_p1 = scmp.lt.s32.totalorder %s17_s10, %s17_s10 }
   0x5   :  { %p702_p0 = scmp.ne.s32.totalorder %s17_s10, %s701_s13  ;;  %p707_p2 = scmp.lt.s32.totalorder %s701_s13, %s701_s13 }
   0x7   :  { %p708_p3 = por %p707_p2, %p706_p1 }
   0x9   :  { %p709_p4 = pnand %p708_p3, %p702_p0 }
   0xb   :  { %712 = shalt.err (!%p709_p4)
}
   0xc   :  { %19 = dma.hbm_to_vmem [thread:$0]  %s831_s0, 128, %s17_s10, [#allocation3]  }
   0xd   :  { %s721_s16 = scalar_lea.vmem %s26_s12, 4096  ;;  %p726_p6 = scmp.lt.s32.totalorder %s26_s12, %s26_s12 }
   0xe   :  { %p722_p5 = scmp.ne.s32.totalorder %s26_s12, %s721_s16  ;;  %p727_p7 = scmp.lt.s32.totalorder %s721_s16, %s721_s16 }
  0x10   :  { %p728_p8 = por %p727_p7, %p726_p6 }
  0x12   :  { %p729_p9 = pnand %p728_p8, %p722_p5 }
  0x14   :  { %732 = shalt.err (!%p729_p9)
}
  0x15   :  { %s761_s17 = smov 64   ;;  %s762_s18 = smov 4  }
  0x16   :  { %31 = dma.hbm_to_vmem [thread:$0]  %s832_s1, 4096, %s26_s12, [#allocation6], %s761_s17, %s761_s17, %s762_s18  }
  0x17   :  { %753 = dma.done.wait [#allocation3], 128  }
  0x18   :  { %754 = vsyncadd [#allocation3], 4294967168 }
  0x19   :  { %755 = dma.done.wait [#allocation6], 4096  }
  0x1a   :  { %756 = vsyncadd [#allocation6], 4294963200  ;;  %v763_v0 = vmov 0.0   ;;  %vm764_vm0 = vmmov 0   ;;  %v661_v1 = vld [vmem:[#allocation5 + $0x38] sm:$0xff]   ;;  %v662_v2 = vld [vmem:[#allocation5 + $0x30] sm:$0xff]  }
  0x1b   :  { %571 = vmatprep.subr.bf16.mxu0 %v763_v0  ;;  %587 = vmatprep.mubr.msk.bf16.mxu0 %vm764_vm0, %v763_v0  ;;  %v663_v3 = vld [vmem:[#allocation5 + $0x28] sm:$0xff]   ;;  %v669_v4 = vld [vmem:[#allocation5 + $0x78] sm:$0xff]   ;;  %v664_v5 = vld [vmem:[#allocation5 + $0x20] sm:$0xff]   ;;  %s765_s0 = smov 120   ;;  %vm470_vm1 = vcmask 64512   ;;  %s766_s22 = smov [#allocation7]  }
  0x1c   :  { %591 = vmatprep.subr.bf16.mxu1 %v763_v0  ;;  %607 = vmatprep.mubr.msk.bf16.mxu1 %vm764_vm0, %v763_v0  ;;  %v670_v6 = vld [vmem:[#allocation5 + $0x70] sm:$0xff]   ;;  %v665_v7 = vld [vmem:[#allocation5 + $0x18] sm:$0xff]   ;;  %v671_v8 = vld [vmem:[#allocation5 + $0x68] sm:$0xff]   ;;  %s493_s23 = sshll.u32 %s766_s22, 4  ;;  %s494_s23 = int_to_ptr.vmem [resolvable:$true] %s493_s23 }
  0x1d   :  { %572 = vmatpush3.bf16.msra.mxu0 %v661_v1  ;;  %592 = vmatpush3.bf16.msra.mxu1 %v669_v4  ;;  %v666_v9 = vld [vmem:[#allocation5 + $0x10] sm:$0xff]   ;;  %v672_v10 = vld [vmem:[#allocation5 + $0x60] sm:$0xff]   ;;  %v667_v11 = vld [vmem:[#allocation5 + $0x8] sm:$0xff]   ;;  %s733_s24 = scalar_lea.vmem %s494_s23, 128  ;;  %p738_p11 = scmp.lt.s32.totalorder %s494_s23, %s494_s23 }
  0x1e   :  { %573 = vmatprep.subr.bf16.mxu0 %v763_v0  ;;  %593 = vmatprep.subr.bf16.mxu1 %v763_v0  ;;  %v673_v12 = vld [vmem:[#allocation5 + $0x58] sm:$0xff]   ;;  %v668_v13 = vld [vmem:[#allocation5] sm:$0xff]   ;;  %v674_v15 = vld [vmem:[#allocation5 + $0x50] sm:$0xff]   ;;  %p734_p10 = scmp.ne.s32.totalorder %s494_s23, %s733_s24  ;;  %p739_p12 = scmp.lt.s32.totalorder %s733_s24, %s733_s24 }
  0x1f   :  { %v39_v14 = vld [vmem:[#allocation2] sm:$0xff]  ;;  %v675_v17 = vld [vmem:[#allocation5 + $0x48] sm:$0xff]   ;;  %v676_v18 = vld [vmem:[#allocation5 + $0x40] sm:$0xff]  }
  0x20   :  { %v40_v16 = vpack.c.bf16 %v39_v14, %v39_v14  ;;  %v677_v19 = vld [vmem:[#allocation5 + $0xb8] sm:$0xff]   ;;  %v678_v20 = vld [vmem:[#allocation5 + $0xb0] sm:$0xff]   ;;  %v679_v21 = vld [vmem:[#allocation5 + $0xa8] sm:$0xff]   ;;  %p740_p13 = por %p739_p12, %p738_p11 }
  0x21   :  { %574 = vmatpush3.bf16.msra.mxu0 %v662_v2  ;;  %594 = vmatpush3.bf16.msra.mxu1 %v670_v6  ;;  %v680_v22 = vld [vmem:[#allocation5 + $0xa0] sm:$0xff]   ;;  %v681_v23 = vld [vmem:[#allocation5 + $0x98] sm:$0xff]   ;;  %v682_v24 = vld [vmem:[#allocation5 + $0x90] sm:$0xff]  }
  0x22   :  { %575 = vmatprep.subr.bf16.mxu0 %v763_v0  ;;  %595 = vmatprep.subr.bf16.mxu1 %v763_v0  ;;  %v683_v25 = vld [vmem:[#allocation5 + $0x88] sm:$0xff]   ;;  %v684_v32 = vld [vmem:[#allocation5 + $0x80] sm:$0xff]   ;;  %v685_v33 = vld [vmem:[#allocation5 + $0xf8] sm:$0xff]   ;;  %p741_p0 = pnand %p740_p13, %p734_p10 }
  0x23   :  { %v686_v34 = vld [vmem:[#allocation5 + $0xf0] sm:$0xff]   ;;  %v687_v35 = vld [vmem:[#allocation5 + $0xe8] sm:$0xff]   ;;  %v688_v36 = vld [vmem:[#allocation5 + $0xe0] sm:$0xff]  }
  0x24   :  { %v689_v37 = vld [vmem:[#allocation5 + $0xd8] sm:$0xff]   ;;  %v690_v38 = vld [vmem:[#allocation5 + $0xd0] sm:$0xff]   ;;  %v691_v39 = vld [vmem:[#allocation5 + $0xc8] sm:$0xff]  }
  0x25   :  { %576 = vmatpush3.bf16.msra.mxu0 %v663_v3  ;;  %596 = vmatpush3.bf16.msra.mxu1 %v671_v8  ;;  %v692_v46 = vld [vmem:[#allocation5 + $0xc0] sm:$0xff]  }
  0x26   :  { %577 = vmatprep.subr.bf16.mxu0 %v763_v0  ;;  %597 = vmatprep.subr.bf16.mxu1 %v763_v0 }
  0x29   :  { %578 = vmatpush3.bf16.msra.mxu0 %v664_v5  ;;  %598 = vmatpush3.bf16.msra.mxu1 %v672_v10 }
  0x2a   :  { %579 = vmatprep.subr.bf16.mxu0 %v763_v0  ;;  %599 = vmatprep.subr.bf16.mxu1 %v763_v0 }
  0x2d   :  { %580 = vmatpush3.bf16.msra.mxu0 %v665_v7  ;;  %600 = vmatpush3.bf16.msra.mxu1 %v673_v12 }
  0x2e   :  { %581 = vmatprep.subr.bf16.mxu0 %v763_v0  ;;  %601 = vmatprep.subr.bf16.mxu1 %v763_v0 }
  0x31   :  { %582 = vmatpush3.bf16.msra.mxu0 %v666_v9  ;;  %602 = vmatpush3.bf16.msra.mxu1 %v674_v15 }
  0x32   :  { %583 = vmatprep.subr.bf16.mxu0 %v763_v0  ;;  %603 = vmatprep.subr.bf16.mxu1 %v763_v0 }
  0x35   :  { %584 = vmatpush3.bf16.msra.mxu0 %v667_v11  ;;  %604 = vmatpush3.bf16.msra.mxu1 %v675_v17 }
  0x36   :  { %585 = vmatprep.subr.bf16.mxu0 %v763_v0  ;;  %605 = vmatprep.subr.bf16.mxu1 %v763_v0 }
  0x39   :  { %586 = vmatpush3.bf16.msra.mxu0 %v668_v13  ;;  %606 = vmatpush3.bf16.msra.mxu1 %v676_v18 }
  0x3a   :  { %611 = vmatprep.subr.bf16.mxu0 %v763_v0  ;;  %631 = vmatprep.subr.bf16.mxu1 %v763_v0 }
  0x3c   :  { %588 = vmatmul.mubr.bf16.vlgmr.msra.gmra.mxu0 %v40_v16 }
  0x3d   :  { %627 = vmatprep.mubr.msk.bf16.mxu0 %vm764_vm0, %v763_v0  ;;  %612 = vmatpush3.bf16.msra.mxu0 %v677_v19 }
  0x3e   :  { %613 = vmatprep.subr.bf16.mxu0 %v763_v0 }
  0x41   :  { %614 = vmatpush3.bf16.msra.mxu0 %v678_v20 }
  0x42   :  { %615 = vmatprep.subr.bf16.mxu0 %v763_v0 }
  0x45   :  { %616 = vmatpush3.bf16.msra.mxu0 %v679_v21 }
  0x46   :  { %617 = vmatprep.subr.bf16.mxu0 %v763_v0 }
  0x49   :  { %618 = vmatpush3.bf16.msra.mxu0 %v680_v22 }
  0x4a   :  { %619 = vmatprep.subr.bf16.mxu0 %v763_v0 }
  0x4d   :  { %620 = vmatpush3.bf16.msra.mxu0 %v681_v23 }
  0x4e   :  { %621 = vmatprep.subr.bf16.mxu0 %v763_v0 }
  0x51   :  { %622 = vmatpush3.bf16.msra.mxu0 %v682_v24 }
  0x52   :  { %623 = vmatprep.subr.bf16.mxu0 %v763_v0 }
  0x55   :  { %624 = vmatpush3.bf16.msra.mxu0 %v683_v25 }
  0x56   :  { %625 = vmatprep.subr.bf16.mxu0 %v763_v0 }
  0x59   :  { %626 = vmatpush3.bf16.msra.mxu0 %v684_v32 }
  0xfc   :  { %v139_v26 = vpop.f32.mrf.mxu0 }
  0xfd   :  { %v145_v27 = vmax.f32 %v139_v26, 0.0 }
  0xfe   :  { %v589_v28 = vpop.f32.mrf.mxu0 }
  0xff   :  { %v146_v29 = vpack.c.bf16 %v145_v27, %v145_v27 }
 0x100   :  { %v142_v30 = vpop.f32.mrf.mxu0 }
 0x101   :  { %608 = vmatmul.mubr.bf16.vlgmr.msra.gmra.mxu1 %v146_v29 }
 0x102   :  { %v590_v31 = vpop.f32.mrf.mxu0  ;;  %647 = vmatprep.mubr.msk.bf16.mxu1 %vm764_vm0, %v763_v0  ;;  %632 = vmatpush3.bf16.msra.mxu1 %v685_v33 }
 0x103   :  { %633 = vmatprep.subr.bf16.mxu1 %v763_v0 }
 0x106   :  { %634 = vmatpush3.bf16.msra.mxu1 %v686_v34 }
 0x107   :  { %635 = vmatprep.subr.bf16.mxu1 %v763_v0 }
 0x10a   :  { %636 = vmatpush3.bf16.msra.mxu1 %v687_v35 }
 0x10b   :  { %637 = vmatprep.subr.bf16.mxu1 %v763_v0 }
 0x10e   :  { %638 = vmatpush3.bf16.msra.mxu1 %v688_v36 }
 0x10f   :  { %639 = vmatprep.subr.bf16.mxu1 %v763_v0 }
 0x112   :  { %640 = vmatpush3.bf16.msra.mxu1 %v689_v37 }
 0x113   :  { %641 = vmatprep.subr.bf16.mxu1 %v763_v0 }
 0x116   :  { %642 = vmatpush3.bf16.msra.mxu1 %v690_v38 }
 0x117   :  { %643 = vmatprep.subr.bf16.mxu1 %v763_v0 }
 0x11a   :  { %644 = vmatpush3.bf16.msra.mxu1 %v691_v39 }
 0x11b   :  { %645 = vmatprep.subr.bf16.mxu1 %v763_v0 }
 0x11e   :  { %646 = vmatpush3.bf16.msra.mxu1 %v692_v46 }
 0x1c1   :  { %v246_v40 = vpop.f32.mrf.mxu1 }
 0x1c2   :  { %v252_v41 = vmax.f32 %v246_v40, 0.0 }
 0x1c3   :  { %v609_v42 = vpop.f32.mrf.mxu1 }
 0x1c4   :  { %v253_v43 = vpack.c.bf16 %v252_v41, %v252_v41 }
 0x1c5   :  { %v249_v44 = vpop.f32.mrf.mxu1 }
 0x1c6   :  { %628 = vmatmul.mubr.bf16.vlgmr.msra.gmra.mxu0 %v253_v43 }
 0x1c7   :  { %v610_v45 = vpop.f32.mrf.mxu1 }
 0x286   :  { %v353_v47 = vpop.f32.mrf.mxu0 }
 0x287   :  { %v359_v48 = vmax.f32 %v353_v47, 0.0 }
 0x288   :  { %v629_v49 = vpop.f32.mrf.mxu0 }
 0x289   :  { %v360_v50 = vpack.c.bf16 %v359_v48, %v359_v48 }
 0x28a   :  { %v356_v51 = vpop.f32.mrf.mxu0 }
 0x28b   :  { %648 = vmatmul.mubr.bf16.vlgmr.msra.gmra.mxu1 %v360_v50 }
 0x28c   :  { %v630_v52 = vpop.f32.mrf.mxu0 }
 0x34b   :  { %v460_v53 = vpop.f32.mrf.mxu1 }
 0x34c   :  { %467 = vrot.lane.b32.xlu0 %v460_v53, %s765_s0 }
 0x34d   :  { %v649_v54 = vpop.f32.mrf.mxu1 }
 0x34f   :  { %v463_v55 = vpop.f32.mrf.mxu1 }
 0x351   :  { %v650_v56 = vpop.f32.mrf.mxu1 }
 0x3be   :  { %v468_v57 = vpop.permute.xlu0 %467 }
 0x3bf   :  { %v471_v58 = vsel %vm470_vm1, %v468_v57, 0.0 }
 0x3c0   :  { %472 = vadd.xlane.f32.xlu0 %v471_v58 }
 0x449   :  { %v473_v59 = vpop.xlane.xlu0 %472 }
 0x44a   :  { %v474_v60 = vrot.slane %v473_v59, 4 }
 0x44c   :  { %v475_v61 = vadd.f32 %v474_v60, %v473_v59 }
 0x44e   :  { %v476_v62 = vrot.slane %v475_v61, 2 }
 0x450   :  { %v477_v63 = vadd.f32 %v476_v62, %v475_v61 }
 0x452   :  { %v478_v0 = vrot.slane %v477_v63, 1 }
 0x454   :  { %v479_v1 = vadd.f32 %v478_v0, %v477_v63 }
 0x456   :  { %651 = vpush %v479_v1 }
 0x487   :  { %s652_s1 = spop %651 }
 0x488   :  { %s483_s21 = smul.f32 0.015625, %s652_s1 }
 0x48a   :  { %v484_v2 = vstv %s483_s21 }
 0x48b   :  { %v485_v3 = vsub.f32 %v460_v53, %v484_v2 }
 0x48d   :  { %486 = vst [vmem:[#allocation7] sm:$0xff] %v485_v3 }
 0x48e   :  { %744 = shalt.err (!%p741_p0)
}
 0x48f   :  { %496 = dma.vmem_to_hbm [thread:$0]  %s494_s23, 128, %s833_s2, [#allocation4]  }
 0x490   :  { %757 = dma.done.wait [#allocation4], 128  }
 0x491   :  { %758 = vsyncadd [#allocation4], 4294967168 }
 0x492   :  { %500 = vsyncpa [#allocation3], 1 }
 0x493   :  { %501 = vsyncpa [#allocation6], 1 }
 0x494   :  { %502 = vsyncpa [#allocation4], 1 }

</bundles_post_ra>
